<compile_context>
chip_gen: v5e
topology: v5e:2x2
jax: 0.10.0
libtpu: 0.0.40
codegen_flags: <defaults>
</compile_context>

<pallas_src>
import functools

import jax
import jax.numpy as jnp
from jax.experimental import pallas as pl
from jax.experimental.pallas import tpu as pltpu


def _cdiv(a, b):
    return -(-a // b)


def _round_up(x, m):
    return _cdiv(x, m) * m


# ----------------------------------------------------------------------------------------------
# One-time data prep (outside the forward): bit-pack the four 0/1 (B, Q) label/mask arrays into
# ONE int8 array.  bit0 = input_labels, bit1 = train_mask, bit2 = output_labels, bit3 = output_mask.
# TODO(synk): packing is exact only for hard {0,1} labels/masks; soft labels would need an
#             unpacked f32/bf16 input path instead.
def pack_labels_masks(input_labels, train_mask, output_labels, output_mask):
    def bit(x):
        return (jnp.asarray(x) > 0.5).astype(jnp.int8)

    return (bit(input_labels)
            | (bit(train_mask) << 1)
            | (bit(output_labels) << 2)
            | (bit(output_mask) << 3))


# ----------------------------------------------------------------------------------------------
_TQ_CAP = 2048                    # max lane-tile (multiple of 128): bounds VMEM independent of Q
_VMEM_BUDGET = 8 * 1024 * 1024    # per-step working-set target (fits v5e's 16 MiB scoped default)


def _pick_tiles(B, Q, *, q_stream_bytes, tb=None, tq=None):
    """Pick (tb, tq) tiles and grid extents (J over q-tiles, I over batch-tiles)."""
    if tq is None:
        tq = Q if Q <= _TQ_CAP else _TQ_CAP
    if tq < Q:
        tq = max(128, (tq // 128) * 128)   # tiles must be lane-aligned unless they cover all of Q
    else:
        tq = Q
    J = _cdiv(Q, tq)

    if tb is None:
        # Footprint: double-buffered streamed flags (1 B) + probs (4 B) tiles, ~6 f32 elementwise
        # temporaries (logits, e, softplus, bce, selects), plus double-buffered q-streamed weights.
        fixed = 2 * q_stream_bytes * tq
        per_elem = 2 * (1 + 4) + 6 * 4
        tb = max(8, (_VMEM_BUDGET - fixed) // (per_elem * tq))
    if B <= 32:
        tb = B                                      # full-dim block: no alignment constraint
    else:
        tb = min(tb, _round_up(_cdiv(B, 2), 32))    # >= 2 batch tiles -> both v7x TCs get work
        tb = max(32, (tb // 32) * 32)               # int8 flags pack 32 rows per sublane tile
        tb = min(tb, _round_up(B, 32))
    I = _cdiv(B, tb)
    return int(tb), int(tq), int(I), int(J)


# ----------------------------------------------------------------------------------------------
def _losses_probs_tail(logits, flags_ref, probs_ref, part_ref, *,
                       n_rows, n_cols, need_row_mask, need_col_mask):
    """Shared epilogue: stable BCE sums (output & train masks) + sigmoid + partial-loss write."""
    tb, tq = flags_ref.shape
    f = flags_ref[...].astype(jnp.int32)      # one unpack, then cheap int32 bit tests on the VPU
    in_lab = (f & 1) != 0
    tr_msk = (f & 2) != 0
    out_lab = (f & 4) != 0
    out_msk = (f & 8) != 0

    # Guard partial edge tiles (block shapes need not divide (B, Q)): garbage rows/cols read by
    # the boundary DMA must never reach the loss sums.  Compiled in only when shapes require it.
    cond_out, cond_in = out_msk, tr_msk
    if need_row_mask:
        rows_ok = (jax.lax.broadcasted_iota(jnp.int32, (tb, 1), 0)
                   + pl.program_id(1) * tb) < n_rows
        cond_out = cond_out & rows_ok
        cond_in = cond_in & rows_ok
    if need_col_mask:
        cols_ok = (jax.lax.broadcasted_iota(jnp.int32, (1, tq), 1)
                   + pl.program_id(0) * tq) < n_cols
        cond_out = cond_out & cols_ok
        cond_in = cond_in & cols_ok

    # Shared stable pieces (one exp + one log1p per element):
    #   e        = exp(-|x|);  softplus(x) = max(x,0) + log1p(e)
    #   BCE(x,y) = softplus(x) - x*y  -> y in {0,1}: softplus - where(y, x, 0)   (select, no mul)
    #   sigmoid  = where(x>=0, 1/(1+e), e/(1+e))   (reuses e; one reciprocal on the EUP)
    e = jnp.exp(-jnp.abs(logits))
    softplus = jnp.maximum(logits, 0.0) + jnp.log1p(e)
    out_loss = jnp.sum(jnp.where(cond_out, softplus - jnp.where(out_lab, logits, 0.0), 0.0))
    in_loss = jnp.sum(jnp.where(cond_in, softplus - jnp.where(in_lab, logits, 0.0), 0.0))

    # approx=True would be nearly free on the EUP (~1e-3 accuracy); keep precise so probs match
    # the f32 reference tightly.
    inv = pl.reciprocal(1.0 + e, approx=False)
    probs_ref[...] = jnp.where(logits >= 0.0, inv, e * inv).astype(probs_ref.dtype)

    # Independent per-grid-step partial-loss block ([0,0,0]=output loss, [0,0,1]=train loss):
    # keeps both grid axes "parallel" (no carried accumulator); reduced in the wrapper.
    r = jax.lax.broadcasted_iota(jnp.int32, (1, 8, 128), 1)
    c = jax.lax.broadcasted_iota(jnp.int32, (1, 8, 128), 2)
    part_ref[...] = jnp.where((r == 0) & (c == 0), out_loss,
                              jnp.where((r == 0) & (c == 1), in_loss, 0.0))


def _maml_mlp_kernel(se_ref, w1_ref, b1_ref, w2_ref, b2_ref, flags_ref, probs_ref, part_ref,
                     *, n_rows, n_cols, need_row_mask, need_col_mask):
    # compute_output (question_dim > 1): Linear(D,256) -> ReLU -> Dropout(identity in eval)
    #                                    -> Linear(256,Q) evaluated on one Q column-tile.
    # bf16 on the MXU with f32 accumulation; the tiny (tb, H) hidden layer is recomputed per
    # q-tile (D is small) so w2 is streamed exactly once from HBM.
    h = jnp.dot(se_ref[...].astype(jnp.bfloat16), w1_ref[...],
                preferred_element_type=jnp.float32) + b1_ref[...]
    h = jnp.maximum(h, 0.0).astype(jnp.bfloat16)
    logits = jnp.dot(h, w2_ref[...], preferred_element_type=jnp.float32) + b2_ref[...]
    _losses_probs_tail(logits, flags_ref, probs_ref, part_ref,
                       n_rows=n_rows, n_cols=n_cols,
                       need_row_mask=need_row_mask, need_col_mask=need_col_mask)


def _maml_irt_kernel(se_ref, diff_ref, flags_ref, probs_ref, part_ref,
                     *, n_rows, n_cols, need_row_mask, need_col_mask):
    # compute_output (question_dim == 1): student_embed (tb,1) - question_difficulty (1,tq)
    logits = se_ref[...] - diff_ref[...]
    _losses_probs_tail(logits, flags_ref, probs_ref, part_ref,
                       n_rows=n_rows, n_cols=n_cols,
                       need_row_mask=need_row_mask, need_col_mask=need_col_mask)


# ----------------------------------------------------------------------------------------------
def _call_maml_kernel(kernel, lead_inputs, lead_specs, flags, *, B, Q, tb, tq, I, J,
                      probs_dtype, flops, weight_bytes):
    assert flags.dtype == jnp.int8, "labels/masks must be pre-packed with pack_labels_masks()"
    need_r, need_c = (B % tb != 0), (Q % tq != 0)
    kern = functools.partial(kernel, n_rows=B, n_cols=Q,
                             need_row_mask=need_r, need_col_mask=need_c)

    grid_spec = pltpu.PrefetchScalarGridSpec(
        num_scalar_prefetch=0,
        grid=(J, I),                                           # q-tiles outer, batch-tiles inner
        in_specs=list(lead_specs) + [
            pl.BlockSpec((tb, tq), lambda j, i: (i, j)),       # packed flags tile (1 B/elem)
        ],
        out_specs=(
            pl.BlockSpec((tb, tq), lambda j, i: (i, j)),       # probs tile -> unpadded (B, Q)
            pl.BlockSpec((1, 8, 128), lambda j, i: (j, i, 0)),  # per-step partial loss sums
        ),
    )
    bytes_accessed = int(weight_bytes + B * Q * (1 + jnp.dtype(probs_dtype).itemsize)
                         + J * I * 8 * 128 * 4)
    probs, part = pl.pallas_call(
        kern,
        out_shape=(jax.ShapeDtypeStruct((B, Q), probs_dtype),
                   jax.ShapeDtypeStruct((J, I * 8, 128), jnp.float32)),
        grid_spec=grid_spec,
        compiler_params=pltpu.CompilerParams(
            dimension_semantics=("parallel", "parallel"),
            vmem_limit_bytes=32 * 1024 * 1024),
        cost_estimate=pl.CostEstimate(flops=int(flops), transcendentals=3 * B * Q,
                                      bytes_accessed=bytes_accessed),
    )(*lead_inputs, flags)

    loss = jnp.sum(part[..., 0]) / B     # compute_loss(out, out_labels, out_mask)/len(train_mask)
    train_loss = jnp.sum(part[..., 1])   # compute_loss(out, in_labels, train_mask, reduction=False)
    return {'loss': loss, 'train_loss': train_loss, 'output': probs}


def maml_forward_mlp(student_embed, w1, b1, w2, b2, flags, *, tb=None, tq=None,
                     probs_dtype=jnp.float32):
    """question_dim > 1 branch.  Weights in (in, out) layout (transpose of torch Linear.weight)."""
    B, Q = flags.shape
    D = student_embed.shape[1]
    H = w1.shape[1]
    tb, tq, I, J = _pick_tiles(B, Q, q_stream_bytes=2 * H + 4, tb=tb, tq=tq)

    se = jnp.asarray(student_embed, jnp.float32)
    w1b = jnp.asarray(w1, jnp.bfloat16)                 # pass pre-cast bf16 weights to skip these
    b1f = jnp.asarray(b1, jnp.float32).reshape(1, H)    # (cheap, B-independent) cast passes
    w2b = jnp.asarray(w2, jnp.bfloat16)
    b2f = jnp.asarray(b2, jnp.float32).reshape(1, Q)

    lead_specs = [
        pl.BlockSpec((tb, D), lambda j, i: (i, 0)),     # student_embed tile (streamed over i)
        pl.BlockSpec((D, H), lambda j, i: (0, 0)),      # w1: resident (~8 KiB bf16)
        pl.BlockSpec((1, H), lambda j, i: (0, 0)),      # b1: resident
        pl.BlockSpec((H, tq), lambda j, i: (0, j)),     # w2: streamed bf16 column tile
        pl.BlockSpec((1, tq), lambda j, i: (0, j)),     # b2: streamed column tile
    ]
    flops = 2 * B * D * H * J + 2 * B * H * Q + 20 * B * Q
    weight_bytes = B * D * 4 + D * H * 2 + H * 4 + H * Q * 2 + Q * 4
    return _call_maml_kernel(_maml_mlp_kernel, (se, w1b, b1f, w2b, b2f), lead_specs, flags,
                             B=B, Q=Q, tb=tb, tq=tq, I=I, J=J, probs_dtype=probs_dtype,
                             flops=flops, weight_bytes=weight_bytes)


def maml_forward_irt(student_embed, question_difficulty, flags, *, tb=None, tq=None,
                     probs_dtype=jnp.float32):
    """question_dim == 1 branch (IRT)."""
    B, Q = flags.shape
    tb, tq, I, J = _pick_tiles(B, Q, q_stream_bytes=4, tb=tb, tq=tq)

    se = jnp.asarray(student_embed, jnp.float32).reshape(B, 1)
    diff = jnp.asarray(question_difficulty, jnp.float32).reshape(1, Q)

    lead_specs = [
        pl.BlockSpec((tb, 1), lambda j, i: (i, 0)),     # student_embed tile
        pl.BlockSpec((1, tq), lambda j, i: (0, j)),     # question_difficulty column tile
    ]
    flops = 21 * B * Q
    weight_bytes = B * 4 + Q * 4
    return _call_maml_kernel(_maml_irt_kernel, (se, diff), lead_specs, flags,
                             B=B, Q=Q, tb=tb, tq=tq, I=I, J=J, probs_dtype=probs_dtype,
                             flops=flops, weight_bytes=weight_bytes)


# ----------------------------------------------------------------------------------------------
# Pure-JAX reference for verification.
def _bce_with_logits(x, y):
    return jnp.maximum(x, 0.0) - x * y + jnp.log1p(jnp.exp(-jnp.abs(x)))


def _ref_forward(logits, input_labels, train_mask, output_labels, output_mask):
    B = logits.shape[0]
    loss = jnp.sum(_bce_with_logits(logits, output_labels) * output_mask) / B
    train_loss = jnp.sum(_bce_with_logits(logits, input_labels) * train_mask)
    return jax.nn.sigmoid(logits), loss, train_loss


def _make_labels(key, B, Q):
    k = jax.random.split(key, 4)
    in_lab = jax.random.bernoulli(k[0], 0.5, (B, Q)).astype(jnp.float32)
    tr_m = jax.random.bernoulli(k[1], 0.3, (B, Q)).astype(jnp.float32)
    out_lab = jax.random.bernoulli(k[2], 0.5, (B, Q)).astype(jnp.float32)
    out_m = jax.random.bernoulli(k[3], 0.7, (B, Q)).astype(jnp.float32)
    return in_lab, tr_m, out_lab, out_m


if __name__ == "__main__":
    key = jax.random.PRNGKey(0)
    keys = jax.random.split(key, 12)

    # ---- MLP branch, aligned shapes: B<=32 -> one full-row tile; tq=128 -> 3 streamed q-tiles ----
    B, D, H, Q = 24, 16, 256, 384
    w1 = jax.random.normal(keys[0], (D, H), jnp.float32) / jnp.sqrt(D)
    b1 = 0.1 * jax.random.normal(keys[1], (H,), jnp.float32)
    w2 = jax.random.normal(keys[2], (H, Q), jnp.float32) / jnp.sqrt(H)
    b2 = 0.1 * jax.random.normal(keys[3], (Q,), jnp.float32)
    se = jax.random.normal(keys[4], (B, D), jnp.float32)
    in_lab, tr_m, out_lab, out_m = _make_labels(keys[5], B, Q)
    flags = pack_labels_masks(in_lab, tr_m, out_lab, out_m)      # one-time data prep

    res = maml_forward_mlp(se, w1, b1, w2, b2, flags, tq=128)
    jax.block_until_ready(res['output'])
    logits_ref = jnp.maximum(se @ w1 + b1, 0.0) @ w2 + b2
    probs_r, loss_r, tr_r = _ref_forward(logits_ref, in_lab, tr_m, out_lab, out_m)
    # bf16 MXU matmul -> looser tolerances vs. the pure-f32 reference
    assert jnp.allclose(res['output'], probs_r, rtol=1e-2, atol=2e-2)
    assert jnp.allclose(res['loss'], loss_r, rtol=3e-2, atol=5e-2)
    assert jnp.allclose(res['train_loss'], tr_r, rtol=3e-2, atol=1.0)

    # ---- MLP branch, ragged shapes: B=40 -> 2 batch tiles (last partial); Q=320, tq=128 ->
    # ---- 3 q-tiles (last partial).  Exercises edge-tile masking + dropped OOB writes. ----
    B2, Q2 = 40, 320
    w2b = jax.random.normal(keys[6], (H, Q2), jnp.float32) / jnp.sqrt(H)
    b2b = 0.1 * jax.random.normal(keys[7], (Q2,), jnp.float32)
    se2 = jax.random.normal(keys[8], (B2, D), jnp.float32)
    in2, trm2, out2, outm2 = _make_labels(keys[9], B2, Q2)
    flags2 = pack_labels_masks(in2, trm2, out2, outm2)

    res2 = maml_forward_mlp(se2, w1, b1, w2b, b2b, flags2, tq=128)
    jax.block_until_ready(res2['output'])
    logits2 = jnp.maximum(se2 @ w1 + b1, 0.0) @ w2b + b2b
    p2, l2, t2 = _ref_forward(logits2, in2, trm2, out2, outm2)
    assert jnp.allclose(res2['output'], p2, rtol=1e-2, atol=2e-2)
    assert jnp.allclose(res2['loss'], l2, rtol=3e-2, atol=5e-2)
    assert jnp.allclose(res2['train_loss'], t2, rtol=3e-2, atol=1.0)

    # ---- IRT branch (question_dim == 1): tiny non-aligned shapes, full-dim blocks, f32-exact ----
    B3, Q3 = 6, 200
    diff = 0.1 * jax.random.normal(keys[10], (1, Q3), jnp.float32)
    se3 = jax.random.normal(keys[11], (B3, 1), jnp.float32)
    in3, trm3, out3, outm3 = _make_labels(jax.random.PRNGKey(42), B3, Q3)
    flags3 = pack_labels_masks(in3, trm3, out3, outm3)

    res3 = maml_forward_irt(se3, diff, flags3)
    jax.block_until_ready(res3['output'])
    logits3 = se3 - diff
    p3, l3, t3 = _ref_forward(logits3, in3, trm3, out3, outm3)
    assert jnp.allclose(res3['output'], p3, rtol=1e-5, atol=1e-5)
    assert jnp.allclose(res3['loss'], l3, rtol=1e-4, atol=1e-3)
    assert jnp.allclose(res3['train_loss'], t3, rtol=1e-4, atol=1e-3)

    print("KERNEL_OK")
</pallas_src>

<mosaic_0001>
module attributes {stable_mosaic.version = 11 : i64} {
  func.func @_maml_mlp_kernel(%arg0: i32, %arg1: i32, %arg2: memref<24x16xf32, #tpu.memory_space<vmem>>, %arg3: memref<16x256xbf16, #tpu.memory_space<vmem>>, %arg4: memref<1x256xf32, #tpu.memory_space<vmem>>, %arg5: memref<256x128xbf16, #tpu.memory_space<vmem>>, %arg6: memref<1x128xf32, #tpu.memory_space<vmem>>, %arg7: memref<24x128xi8, #tpu.memory_space<vmem>>, %arg8: memref<24x128xf32, #tpu.memory_space<vmem>>, %arg9: memref<1x8x128xf32, #tpu.memory_space<vmem>>) attributes {dimension_semantics = [#tpu.dimension_semantics<parallel>, #tpu.dimension_semantics<parallel>], iteration_bounds = array<i64: 3, 1>, scalar_prefetch = 0 : i64, scratch_operands = 0 : i64, tpu.core_type = #tpu.core_type<tc>, window_params = [{transform_indices = @transform_0, window_bounds = array<i64: 24, 16>}, {pipeline_mode = #tpu.pipeline_mode<synchronous>, transform_indices = @transform_1, window_bounds = array<i64: 16, 256>}, {pipeline_mode = #tpu.pipeline_mode<synchronous>, transform_indices = @transform_2, window_bounds = array<i64: 1, 256>}, {transform_indices = @transform_3, window_bounds = array<i64: 256, 128>}, {transform_indices = @transform_4, window_bounds = array<i64: 1, 128>}, {transform_indices = @transform_5, window_bounds = array<i64: 24, 128>}, {transform_indices = @transform_6, window_bounds = array<i64: 24, 128>}, {transform_indices = @transform_7, window_bounds = array<i64: 1, 8, 128>}]} {
    %c0 = arith.constant 0 : index
    %c0_0 = arith.constant 0 : index
    %0 = vector.load %arg2[%c0, %c0_0] : memref<24x16xf32, #tpu.memory_space<vmem>>, vector<24x16xf32>
    %1 = arith.truncf %0 : vector<24x16xf32> to vector<24x16xbf16>
    %c0_1 = arith.constant 0 : index
    %c0_2 = arith.constant 0 : index
    %2 = vector.load %arg3[%c0_1, %c0_2] : memref<16x256xbf16, #tpu.memory_space<vmem>>, vector<16x256xbf16>
    %cst = arith.constant dense<0.000000e+00> : vector<24x256xf32>
    %3 = tpu.matmul %1, %2, %cst {dimension_numbers = #tpu.dot_dimension_numbers<[1], [0], [0], [1], [0, 0, 1, 1], [], []>} : vector<24x16xbf16>, vector<16x256xbf16>, vector<24x256xf32> -> vector<24x256xf32>
    %c0_3 = arith.constant 0 : index
    %c0_4 = arith.constant 0 : index
    %4 = vector.load %arg4[%c0_3, %c0_4] : memref<1x256xf32, #tpu.memory_space<vmem>>, vector<1x256xf32>
    %5 = vector.broadcast %4 : vector<1x256xf32> to vector<24x256xf32>
    %6 = arith.addf %3, %5 : vector<24x256xf32>
    %cst_5 = arith.constant 0.000000e+00 : f32
    %7 = vector.broadcast %cst_5 : f32 to vector<24x256xf32>
    %8 = arith.maximumf %6, %7 : vector<24x256xf32>
    %9 = arith.truncf %8 : vector<24x256xf32> to vector<24x256xbf16>
    %c0_6 = arith.constant 0 : index
    %c0_7 = arith.constant 0 : index
    %10 = vector.load %arg5[%c0_6, %c0_7] : memref<256x128xbf16, #tpu.memory_space<vmem>>, vector<256x128xbf16>
    %cst_8 = arith.constant dense<0.000000e+00> : vector<24x128xf32>
    %11 = tpu.matmul %9, %10, %cst_8 {dimension_numbers = #tpu.dot_dimension_numbers<[1], [0], [0], [1], [0, 0, 1, 1], [], []>} : vector<24x256xbf16>, vector<256x128xbf16>, vector<24x128xf32> -> vector<24x128xf32>
    %c0_9 = arith.constant 0 : index
    %c0_10 = arith.constant 0 : index
    %12 = vector.load %arg6[%c0_9, %c0_10] : memref<1x128xf32, #tpu.memory_space<vmem>>, vector<1x128xf32>
    %13 = vector.broadcast %12 : vector<1x128xf32> to vector<24x128xf32>
    %14 = arith.addf %11, %13 : vector<24x128xf32>
    %c0_11 = arith.constant 0 : index
    %c0_12 = arith.constant 0 : index
    %15 = vector.load %arg7[%c0_11, %c0_12] : memref<24x128xi8, #tpu.memory_space<vmem>>, vector<24x128xi8>
    %16 = arith.extsi %15 : vector<24x128xi8> to vector<24x128xi32>
    %c1_i32 = arith.constant 1 : i32
    %17 = vector.broadcast %c1_i32 : i32 to vector<24x128xi32>
    %18 = arith.andi %16, %17 : vector<24x128xi32>
    %c0_i32 = arith.constant 0 : i32
    %19 = vector.broadcast %c0_i32 : i32 to vector<24x128xi32>
    %20 = arith.cmpi ne, %18, %19 : vector<24x128xi32>
    %c2_i32 = arith.constant 2 : i32
    %21 = vector.broadcast %c2_i32 : i32 to vector<24x128xi32>
    %22 = arith.andi %16, %21 : vector<24x128xi32>
    %c0_i32_13 = arith.constant 0 : i32
    %23 = vector.broadcast %c0_i32_13 : i32 to vector<24x128xi32>
    %24 = arith.cmpi ne, %22, %23 : vector<24x128xi32>
    %c4_i32 = arith.constant 4 : i32
    %25 = vector.broadcast %c4_i32 : i32 to vector<24x128xi32>
    %26 = arith.andi %16, %25 : vector<24x128xi32>
    %c0_i32_14 = arith.constant 0 : i32
    %27 = vector.broadcast %c0_i32_14 : i32 to vector<24x128xi32>
    %28 = arith.cmpi ne, %26, %27 : vector<24x128xi32>
    %c8_i32 = arith.constant 8 : i32
    %29 = vector.broadcast %c8_i32 : i32 to vector<24x128xi32>
    %30 = arith.andi %16, %29 : vector<24x128xi32>
    %c0_i32_15 = arith.constant 0 : i32
    %31 = vector.broadcast %c0_i32_15 : i32 to vector<24x128xi32>
    %32 = arith.cmpi ne, %30, %31 : vector<24x128xi32>
    %33 = math.absf %14 : vector<24x128xf32>
    %cst_16 = arith.constant 0.000000e+00 : f32
    %34 = vector.broadcast %cst_16 : f32 to vector<24x128xf32>
    %35 = arith.subf %34, %33 : vector<24x128xf32>
    %36 = math.exp %35 : vector<24x128xf32>
    %cst_17 = arith.constant 0.000000e+00 : f32
    %37 = vector.broadcast %cst_17 : f32 to vector<24x128xf32>
    %38 = arith.maximumf %14, %37 : vector<24x128xf32>
    %39 = math.log1p %36 : vector<24x128xf32>
    %40 = arith.addf %38, %39 : vector<24x128xf32>
    %cst_18 = arith.constant 0.000000e+00 : f32
    %41 = vector.broadcast %cst_18 : f32 to vector<24x128xf32>
    %42 = arith.select %28, %14, %41 : vector<24x128xi1>, vector<24x128xf32>
    %43 = arith.subf %40, %42 : vector<24x128xf32>
    %cst_19 = arith.constant 0.000000e+00 : f32
    %44 = vector.broadcast %cst_19 : f32 to vector<24x128xf32>
    %45 = arith.select %32, %43, %44 : vector<24x128xi1>, vector<24x128xf32>
    %46 = vector.shape_cast %45 : vector<24x128xf32> to vector<1x24x128xf32>
    %cst_20 = arith.constant dense<0.000000e+00> : vector<1xf32>
    %47 = vector.multi_reduction <add>, %46, %cst_20 [1, 2] : vector<1x24x128xf32> to vector<1xf32>
    %48 = vector.shape_cast %47 : vector<1xf32> to vector<1x1x1xf32>
    %49 = vector.extract %48[0, 0, 0] : f32 from vector<1x1x1xf32>
    %cst_21 = arith.constant 0.000000e+00 : f32
    %50 = vector.broadcast %cst_21 : f32 to vector<24x128xf32>
    %51 = arith.select %20, %14, %50 : vector<24x128xi1>, vector<24x128xf32>
    %52 = arith.subf %40, %51 : vector<24x128xf32>
    %cst_22 = arith.constant 0.000000e+00 : f32
    %53 = vector.broadcast %cst_22 : f32 to vector<24x128xf32>
    %54 = arith.select %24, %52, %53 : vector<24x128xi1>, vector<24x128xf32>
    %55 = vector.shape_cast %54 : vector<24x128xf32> to vector<1x24x128xf32>
    %cst_23 = arith.constant dense<0.000000e+00> : vector<1xf32>
    %56 = vector.multi_reduction <add>, %55, %cst_23 [1, 2] : vector<1x24x128xf32> to vector<1xf32>
    %57 = vector.shape_cast %56 : vector<1xf32> to vector<1x1x1xf32>
    %58 = vector.extract %57[0, 0, 0] : f32 from vector<1x1x1xf32>
    %cst_24 = arith.constant 1.000000e+00 : f32
    %59 = vector.broadcast %cst_24 : f32 to vector<24x128xf32>
    %60 = arith.addf %59, %36 : vector<24x128xf32>
    %61 = tpu.reciprocal %60 : vector<24x128xf32> -> vector<24x128xf32>
    %cst_25 = arith.constant 0.000000e+00 : f32
    %62 = vector.broadcast %cst_25 : f32 to vector<24x128xf32>
    %63 = arith.cmpf oge, %14, %62 : vector<24x128xf32>
    %64 = arith.mulf %36, %61 : vector<24x128xf32>
    %65 = arith.select %63, %61, %64 : vector<24x128xi1>, vector<24x128xf32>
    %c0_26 = arith.constant 0 : index
    %c0_27 = arith.constant 0 : index
    %66 = vector.load %arg8[%c0_26, %c0_27] : memref<24x128xf32, #tpu.memory_space<vmem>>, vector<24x128xf32>
    tpu.vector_store %arg8[%c0_26, %c0_27], %65 {strides = array<i32>} : memref<24x128xf32, #tpu.memory_space<vmem>>, vector<24x128xf32>,
    %67 = tpu.iota {dimensions = array<i32: 1>} : vector<1x8x128xi32>
    %68 = tpu.iota {dimensions = array<i32: 2>} : vector<1x8x128xi32>
    %c0_i32_28 = arith.constant 0 : i32
    %69 = vector.broadcast %c0_i32_28 : i32 to vector<1x8x128xi32>
    %70 = arith.cmpi eq, %67, %69 : vector<1x8x128xi32>
    %c0_i32_29 = arith.constant 0 : i32
    %71 = vector.broadcast %c0_i32_29 : i32 to vector<1x8x128xi32>
    %72 = arith.cmpi eq, %68, %71 : vector<1x8x128xi32>
    %73 = arith.andi %70, %72 : vector<1x8x128xi1>
    %c0_i32_30 = arith.constant 0 : i32
    %74 = vector.broadcast %c0_i32_30 : i32 to vector<1x8x128xi32>
    %75 = arith.cmpi eq, %67, %74 : vector<1x8x128xi32>
    %c1_i32_31 = arith.constant 1 : i32
    %76 = vector.broadcast %c1_i32_31 : i32 to vector<1x8x128xi32>
    %77 = arith.cmpi eq, %68, %76 : vector<1x8x128xi32>
    %78 = arith.andi %75, %77 : vector<1x8x128xi1>
    %cst_32 = arith.constant 0.000000e+00 : f32
    %79 = vector.broadcast %58 : f32 to vector<1x8x128xf32>
    %80 = vector.broadcast %cst_32 : f32 to vector<1x8x128xf32>
    %81 = arith.select %78, %79, %80 : vector<1x8x128xi1>, vector<1x8x128xf32>
    %82 = vector.broadcast %49 : f32 to vector<1x8x128xf32>
    %83 = arith.select %73, %82, %81 : vector<1x8x128xi1>, vector<1x8x128xf32>
    %c0_33 = arith.constant 0 : index
    %c0_34 = arith.constant 0 : index
    %c0_35 = arith.constant 0 : index
    %84 = vector.load %arg9[%c0_33, %c0_34, %c0_35] : memref<1x8x128xf32, #tpu.memory_space<vmem>>, vector<1x8x128xf32>
    tpu.vector_store %arg9[%c0_33, %c0_34, %c0_35], %83 {strides = array<i32>} : memref<1x8x128xf32, #tpu.memory_space<vmem>>, vector<1x8x128xf32>,
    return
  }
  func.func @transform_0(%arg0: i32, %arg1: i32) -> (i32, i32) {
    %c0_i32 = arith.constant 0 : i32
    %c0_i32_0 = arith.constant 0 : i32
    return %arg1, %c0_i32 : i32, i32
  }
  func.func @transform_1(%arg0: i32, %arg1: i32) -> (i32, i32) {
    %c0_i32 = arith.constant 0 : i32
    %c0_i32_0 = arith.constant 0 : i32
    %c0_i32_1 = arith.constant 0 : i32
    return %c0_i32, %c0_i32_0 : i32, i32
  }
  func.func @transform_2(%arg0: i32, %arg1: i32) -> (i32, i32) {
    %c0_i32 = arith.constant 0 : i32
    %c0_i32_0 = arith.constant 0 : i32
    %c0_i32_1 = arith.constant 0 : i32
    return %c0_i32, %c0_i32_0 : i32, i32
  }
  func.func @transform_3(%arg0: i32, %arg1: i32) -> (i32, i32) {
    %c0_i32 = arith.constant 0 : i32
    %c0_i32_0 = arith.constant 0 : i32
    return %c0_i32, %arg0 : i32, i32
  }
  func.func @transform_4(%arg0: i32, %arg1: i32) -> (i32, i32) {
    %c0_i32 = arith.constant 0 : i32
    %c0_i32_0 = arith.constant 0 : i32
    return %c0_i32, %arg0 : i32, i32
  }
  func.func @transform_5(%arg0: i32, %arg1: i32) -> (i32, i32) {
    %c0_i32 = arith.constant 0 : i32
    return %arg1, %arg0 : i32, i32
  }
  func.func @transform_6(%arg0: i32, %arg1: i32) -> (i32, i32) {
    %c0_i32 = arith.constant 0 : i32
    return %arg1, %arg0 : i32, i32
  }
  func.func @transform_7(%arg0: i32, %arg1: i32) -> (i32, i32, i32) {
    %c0_i32 = arith.constant 0 : i32
    %c0_i32_0 = arith.constant 0 : i32
    return %arg0, %arg1, %c0_i32 : i32, i32, i32
  }
}

</mosaic_0001>

<bundles_post_ra>
// kernel: tpu_custom_call.1
= control target key start
LH: loop header
LB: loop body
LE: loop exit
PB: predicated region body
PF: predicated region fallthrough
CT: control target
= control target key end

     0   :  { %13 = vsyncpa [#allocation3], 0  ;;  %s1839_s0 = inlined_call_operand.vmem [shape: f32[24,16], index: 0, kind: input, shape index: {}]   ;;  %s1840_s1 = inlined_call_operand.vmem [shape: bf16[16,256], index: 1, kind: input, shape index: {}]   ;;  %s1841_s2 = inlined_call_operand.vmem [shape: f32[1,256], index: 2, kind: input, shape index: {}]   ;;  %s1842_s3 = inlined_call_operand.hbm [shape: bf16[256,384], index: 3, kind: input, shape index: {}]   ;;  %s1843_s4 = inlined_call_operand.vmem [shape: f32[1,384], index: 4, kind: input, shape index: {}]   ;;  %s1844_s5 = inlined_call_operand.vmem [shape: s8[24,384], index: 5, kind: input, shape index: {}]   ;;  %s1845_s6 = inlined_call_operand.hbm [shape: f32[24,384], index: 6, kind: output, shape index: {0}]   ;;  %s1846_s7 = inlined_call_operand.hbm [shape: f32[3,8,128], index: 7, kind: output, shape index: {1}]  }
   0x1   :  { %15 = vsyncpa [#allocation3 + $0x1], 0 }
   0x2   :  { %16 = vsyncpa [#allocation4], 0 }
   0x3   :  { %18 = vsyncpa [#allocation4 + $0x1], 0 }
   0x4   :  { %19 = vsyncpa [#allocation8], 0 }
   0x5   :  { %21 = vsyncpa [#allocation8 + $0x1], 0  ;;  %s1475_s24 = smov 0   ;;  %s1477_s25 = smov 0  }
   0x6   :  { %s1479_s26 = smov 0   ;;  %s1481_s27 = smov 0  }
   0x7   :  { %s1483_s28 = smov 0   ;;  %s1485_s29 = smov 0  }
   0x8 LB: > { %1851 = sst [smem:[#allocation12_spill]] %s1407_s24  ;;  %s1061_s30 = sadd.s32 4294967295, %s1427_s29   ;;  %s1427_s29 = sphi %s1485_s29, %s27_s29   ;;  %s1423_s28 = sphi %s1483_s28, %s1888_s28   ;;  %s1419_s27 = sphi %s1481_s27, %s1887_s27   ;;  %s1415_s26 = sphi %s1479_s26, %s1883_s26   ;;  %s1411_s25 = sphi %s1477_s25, %s1886_s25   ;;  %s1407_s24 = sphi %s1475_s24, %s1885_s24  }
   0x9   : > { %1852 = sst [smem:[#allocation13_spill]] %s1415_s26  ;;  %s1062_s8 = sadd.s32 4294967294, %s1427_s29  }
   0xa   : > { %s39_s9 = sadd.s32 1, %s1423_s28  ;;  %s114_s10 = sadd.s32 1, %s1415_s26 }
   0xb   : > { %p41_p0 = scmp.ge.s32.totalorder %s39_s9, 3  ;;  %p121_p1 = scmp.ne.s32.totalorder %s1415_s26, %s1411_s25 }
   0xc   : > { %p122_p2 = scmp.eq.s32.totalorder %s1427_s29, 0  ;;  %p127_p3 = scmp.ne.s32.totalorder %s1411_s25, %s1407_s24 }
   0xd   : > { %s1890_s9 = smov (%p41_p0, %s39_s9), 0  ;;  %p128_p5 = scmp.eq.s32.totalorder %s1061_s30, 0 }
   0xe   : > { %1853 = sst [smem:[#allocation14_spill]] %s1890_s9  ;;  %p1516_p4 = por %p122_p2, %p121_p1 }
   0xf   : > { %s111_s12 = ssub.s32 %s1423_s28, %s1890_s9  ;;  %p207_p6 = scmp.eq.s32.totalorder %s1061_s30, 2 }
  0x10   : > { %p112_p7 = scmp.eq.s32.totalorder %s111_s12, 0  ;;  %p1522_p8 = por %p128_p5, %p127_p3 }
  0x11   : > { %p1526_p9 = por %p207_p6, %p121_p1  ;;  %p213_p10 = scmp.eq.s32.totalorder %s1062_s8, 2 }
  0x12   : > { %s1531_s15 = scalar_select %p112_p7, %s1415_s26, %s114_s10  }
  0x13   : > { %p1533_p11 = por %p213_p10, %p127_p3  ;;  %p1065_p12 = scmp.ge.s32.totalorder %s1427_s29, 3 }
  0x14   : > { %1857 = sst [smem:[#allocation15_spill]] %s1531_s15  ;;  %s276_s17 = sand.u32 (!%p1065_p12), 1, %s1415_s26  }
  0x15   : > { %s1858_s16 = scalar_select %p1533_p11, 1, 0 }
  0x16   : > { %272 = sbr.rel (%p1065_p12) target bundleno = 36 (0x24), region = 28  ;;  %s1067_s18 = sshll.u32 (!%p1065_p12), %s1423_s28, 2 }
  0x17   : > { %1859 = sst [smem:[#allocation16_spill]] %s1858_s16  ;;  %s1066_s19 = sshll.u32 (!%p1065_p12), %s276_s17, 7 }
  0x18   : > { %s284_s22 = scalar_lea.hbm (!%p1065_p12), %s1842_s3, %s1067_s18  ;;  %s280_s30 = scalar_lea.vmem (!%p1065_p12), [#allocation2], %s1066_s19 }
  0x19   : > { %s285_s23 = sshll.u32 (!%p1065_p12), %s284_s22, 4  ;;  %s287_s8 = sshll.u32 (!%p1065_p12), %s280_s30, 4  ;;  %s286_s23 = int_to_ptr.hbm [resolvable:$true] %s285_s23  ;;  %s288_s8 = int_to_ptr.vmem [resolvable:$true] %s287_s8 }
  0x1a   : > { %s277_s10 = scalar_lea.sflag (!%p1065_p12), [#allocation3], %s276_s17  ;;  %s1429_s12 = smov (!%p1065_p12), 192  }
  0x1b   : > { %s1430_s9 = smov 64   ;;  %s1431_s15 = smov 4  }
  0x1c   : > { %1198 = dma.hbm_to_vmem [thread:$0]  (%p1516_p4), %s286_s23, 2048, %s288_s8, %s277_s10, %s1429_s12, %s1430_s9, %s1431_s15  }
  0x1d   : > { %302 = sbr.rel (!%p1516_p4) target bundleno = 36 (0x24), region = 40  ;;  %s1068_s16 = sshll.u32 (%p1516_p4), %s1423_s28, 1 }
  0x1e   : > { %s1191_s26 = smul.u32 (%p1516_p4), 6, %s276_s17  ;;  %s311_s18 = scalar_lea.vmem (%p1516_p4), %s1844_s5, %s1068_s16 }
  0x1f   : > { %v328_v0 = vld [vmem:[%s311_s18] sm:$0x3] (%p1516_p4)  ;;  %v330_v1 = vld [vmem:[%s311_s18 + $0x6] sm:$0x3] (%p1516_p4)  ;;  %v332_v2 = vld [vmem:[%s311_s18 + $0xc] sm:$0x3] (%p1516_p4) }
  0x20   : > { %s306_s19 = scalar_lea.vmem (%p1516_p4), [#allocation5], %s1191_s26 }
  0x21   : > { %329 = vst [vmem:[%s306_s19] sm:$0x3] (%p1516_p4), %v328_v0 }
  0x22   : > { %331 = vst [vmem:[%s306_s19 + $0x2] sm:$0x3] %v330_v1 }
  0x23   : > { %333 = vst [vmem:[%s306_s19 + $0x4] sm:$0x3] %v332_v2 }
  0x24 PF: > { %p1069_p13 = scmp.ge.s32.totalorder %s1427_s29, 1  ;;  %p354_p0 = scmp.lt.s32.totalorder %s1427_s29, 4 }
  0x26   : > { %p355_p1 = pnand %p1069_p13, %p354_p0 }
  0x27   : > { %s1554_s9 = sand.u32 (!%p355_p1), 1, %s1411_s25  }
  0x28   : > { %358 = sbr.rel (%p355_p1) target bundleno = 561 (0x231), region = 74  ;;  %s1070_s24 = sshll.u32 (!%p355_p1), %s1554_s9, 7 }
  0x29   : > { %s361_s26 = scalar_lea.sflag (!%p355_p1), [#allocation3], %s1554_s9  ;;  %s1558_s11 = scalar_lea.vmem (!%p355_p1), [#allocation2], %s1070_s24 }
  0x2d   : > { %1394 = dma.done.wait (%p1522_p8), %s361_s26, 2048  }
  0x2e   : > { %1396 = vsyncadd (%p1522_p8), %s361_s26, 4294965248  ;;  %v1074_v3 = vld [vmem:[%s1840_s1] sm:$0xf]  ;;  %v1154_v4 = vld [vmem:[%s1840_s1 + $0x4] sm:$0xf0]  ;;  %vm455_vm0 = vcmask 130048  }
  0x2f   : > { %v1153_v5 = vld [vmem:[%s1840_s1 + $0x4] sm:$0xf]  ;;  %v1075_v6 = vor.u32 %v1154_v4, %v1074_v3  ;;  %v1076_v7 = vld [vmem:[%s1840_s1 + $0x8] sm:$0xf0]  ;;  %v1162_v12 = vld [vmem:[%s1558_s11 + $0x38] sm:$0xff]  ;;  %p426_p2 = scmp.lt.s32.totalorder %s1419_s27, 2 }
  0x30   : > { %v432_v8 = vld [vmem:[%s1839_s0] sm:$0xff]  ;;  %v433_v9 = vld [vmem:[%s1839_s0 + $0x8] sm:$0xff]  ;;  %v1079_v10 = vor.u32 %v1153_v5, %v1076_v7  ;;  %v1170_v13 = vld [vmem:[%s1558_s11 + $0x78] sm:$0xff]  ;;  %1175 = vmatpush.bf16.msra.mxu2 %v1162_v12  ;;  %s1192_s23 = smul.u32 6, %s1554_s9  ;;  %s1149_s10 = sshll.u32 %s1419_s27, 3 }
  0x31   : > { %v435_v11 = vpack.c.bf16 %v433_v9, %v432_v8  ;;  %469 = vmatpush.bf16.msra.mxu0 %v1075_v6  ;;  %v1161_v14 = vld [vmem:[%s1558_s11 + $0x30] sm:$0xff]  ;;  %1183 = vmatpush.bf16.msra.mxu3 %v1170_v13  ;;  %v1160_v16 = vld [vmem:[%s1558_s11 + $0x28] sm:$0xff]  ;;  %v1159_v18 = vld [vmem:[%s1558_s11 + $0x20] sm:$0xff]  ;;  %s1599_s24 = scalar_select %p426_p2, %s1419_s27, 2 }
  0x32   : > { %487 = vmatpush.bf16.msra.mxu1 %v1079_v10  ;;  %v1169_v15 = vld [vmem:[%s1558_s11 + $0x70] sm:$0xff]  ;;  %v1168_v17 = vld [vmem:[%s1558_s11 + $0x68] sm:$0xff]  ;;  %v1167_v19 = vld [vmem:[%s1558_s11 + $0x60] sm:$0xff]  ;;  %s373_s30 = scalar_lea.vmem [#allocation5], %s1192_s23  ;;  %s1193_s13 = smul.u32 24, %s1554_s9 }
  0x33   : > { %v434_v20 = vld [vmem:[%s1839_s0 + $0x10] sm:$0xff]  ;;  %s428_s16 = scalar_lea.vmem %s1843_s4, %s1599_s24  ;;  %v1158_v22 = vld [vmem:[%s1558_s11 + $0x18] sm:$0xff]  ;;  %v1156_v26 = vld [vmem:[%s1558_s11 + $0x8] sm:$0xff]  ;;  %s881_s18 = scalar_lea.hbm %s1845_s6, %s1149_s10 }
  0x34   : > { %1080 = vmatmul.msk.bf16.vlgmr.msra.gmra.mxu0 %vm455_vm0, %v435_v11  ;;  %1176 = vmatpush.bf16.msra.mxu2 %v1161_v14  ;;  %v436_v21 = vpack.c.bf16 %v434_v20, %v434_v20  ;;  %v1166_v23 = vld [vmem:[%s1558_s11 + $0x58] sm:$0xff]  ;;  %v1157_v24 = vld [vmem:[%s1558_s11 + $0x10] sm:$0xff]  ;;  %v1164_v27 = vld [vmem:[%s1558_s11 + $0x48] sm:$0xff]  ;;  %s1728_s8 = scalar_lea.vmem [#allocation6], %s1193_s13  ;;  %s884_s24 = sshll.u32 %s881_s18, 4  ;;  %s885_s24 = int_to_ptr.hbm [resolvable:$true] %s884_s24 }
  0x35   : > { %640 = vmatpush.bf16.msrb.mxu0 %v1162_v12  ;;  %1082 = vmatmul.msk.bf16.vlgmr.msra.gmra.mxu1 %vm455_vm0, %v435_v11  ;;  %v1165_v25 = vld [vmem:[%s1558_s11 + $0x50] sm:$0xff]  ;;  %v1155_v28 = vld [vmem:[%s1558_s11] sm:$0xff]  ;;  %s882_s19 = sshll.u32 %s1728_s8, 4  ;;  %s863_s26 = scalar_lea.sflag [#allocation4], %s1554_s9  ;;  %s883_s19 = int_to_ptr.vmem [resolvable:$true] %s882_s19 }
  0x36   : > { %658 = vmatpush.bf16.msrb.mxu1 %v1170_v13  ;;  %1184 = vmatpush.bf16.msra.mxu3 %v1169_v15  ;;  %v1163_v29 = vld [vmem:[%s1558_s11 + $0x40] sm:$0xff]  ;;  %s1327_s15 = sshra.s32 %s885_s24, 4  ;;  %s1333_s11 = scalar_lea.hbm %s1845_s6, 72  ;;  %s1328_s15 = int_to_ptr.hbm [resolvable:$true] %s1327_s15 }
  0x37   : > { %v439_v30 = vld [vmem:[%s1841_s2] sm:$0x3]  ;;  %p1334_p6 = scmp.lt.s32.totalorder %s1328_s15, %s1845_s6 }
  0x38   : > { %1177 = vmatpush.bf16.msra.mxu2 %v1160_v16  ;;  %v441_v33 = vperm.slane %v439_v30, 0  ;;  %v442_v34 = vperm.slane %v439_v30, 1  ;;  %v1266_v57 = vld [vmem:[%s428_s16] ss:$0 sm:$0xff]  ;;  %s1329_s16 = scalar_lea.hbm %s1328_s15, 24 }
  0x39   : > { %641 = vmatpush.bf16.msrb.mxu0 %v1161_v14  ;;  %v1172_v7 = vld [vmem:[%s373_s30] sm:$0xf]   ;;  %p1330_p3 = scmp.ne.s32.totalorder %s1328_s15, %s1329_s16  ;;  %p1335_p7 = scmp.lt.s32.totalorder %s1333_s11, %s1329_s16 }
  0x3a   : > { %659 = vmatpush.bf16.msrb.mxu1 %v1169_v15  ;;  %1185 = vmatpush.bf16.msra.mxu3 %v1168_v17  ;;  %v1632_v14 = vunpack.c.0.s8 %v1172_v7 }
  0x3b   : > { %p1331_p4 = pnand %p1330_p3, %p1526_p9  ;;  %p1336_p8 = por %p1335_p7, %p1334_p6 }
  0x3c   : > { %1178 = vmatpush.bf16.msra.mxu2 %v1159_v18  ;;  %v694_v20 = vand.u32 4, %v1632_v14 }
  0x3d   : > { %642 = vmatpush.bf16.msrb.mxu0 %v1160_v16  ;;  %p1332_p5 = pneg %p1331_p4 }
  0x3e   : > { %660 = vmatpush.bf16.msrb.mxu1 %v1168_v17  ;;  %1186 = vmatpush.bf16.msra.mxu3 %v1167_v19  ;;  %v678_v17 = vld [vmem:[%s373_s30 + $0x4] sm:$0x3]  ;;  %vm1645_vm1 = vcmp.ne.s32.totalorder %v694_v20, 0 }
  0x3f   : > { %p1337_p10 = pnand %p1336_p8, %p1332_p5 }
  0x40   : > { %1179 = vmatpush.bf16.msra.mxu2 %v1158_v22 }
  0x41   : > { %643 = vmatpush.bf16.msrb.mxu0 %v1159_v18 }
  0x42   : > { %661 = vmatpush.bf16.msrb.mxu1 %v1167_v19  ;;  %1187 = vmatpush.bf16.msra.mxu3 %v1166_v23  ;;  %v1636_v19 = vunpack.c.1.s8 %v1172_v7 }
  0x44   : > { %1081 = vmatmul.msk.bf16.gmra.mxu0 %vm455_vm0, %v436_v21  ;;  %1180 = vmatpush.bf16.msra.mxu2 %v1157_v24 }
  0x45   : > { %1083 = vmatmul.msk.bf16.gmra.mxu1 %vm455_vm0, %v436_v21  ;;  %644 = vmatpush.bf16.msrb.mxu0 %v1158_v22  ;;  %v682_v22 = vand.u32 1, %v1632_v14 }
  0x46   : > { %662 = vmatpush.bf16.msrb.mxu1 %v1166_v23  ;;  %1188 = vmatpush.bf16.msra.mxu3 %v1165_v25 }
  0x47   : > { %vm1654_vm2 = vcmp.ne.s32.totalorder %v682_v22, 0 }
  0x48   : > { %1181 = vmatpush.bf16.msra.mxu2 %v1156_v26 }
  0x49   : > { %645 = vmatpush.bf16.msrb.mxu0 %v1157_v24 }
  0x4a   : > { %663 = vmatpush.bf16.msrb.mxu1 %v1165_v25  ;;  %1189 = vmatpush.bf16.msra.mxu3 %v1164_v27  ;;  %v1640_v25 = vunpack.c.0.s8 %v678_v17 }
  0x4c   : > { %1182 = vmatpush.bf16.msra.mxu2 %v1155_v28 }
  0x4d   : > { %646 = vmatpush.bf16.msrb.mxu0 %v1156_v26 }
  0x4e   : > { %664 = vmatpush.bf16.msrb.mxu1 %v1164_v27  ;;  %1190 = vmatpush.bf16.msra.mxu3 %v1163_v29  ;;  %v695_v27 = vand.u32 4, %v1636_v19 }
  0x50   : > { %vm1667_vm3 = vcmp.ne.s32.totalorder %v695_v27, 0 }
  0x51   : > { %647 = vmatpush.bf16.msrb.mxu0 %v1155_v28 }
  0x52   : > { %665 = vmatpush.bf16.msrb.mxu1 %v1163_v29 }
  0xb1   : > { %v471_v31 = vpop.f32.mrf.mxu0 }
  0xb2   : > { %v489_v32 = vpop.f32.mrf.mxu1  ;;  %v472_v35 = vadd.f32 %v471_v31, %v441_v33 }
  0xb3   : > { %v490_v36 = vadd.f32 %v489_v32, %v442_v34  ;;  %v683_v32 = vand.u32 1, %v1636_v19 }
  0xb4   : > { %v498_v41 = vmax.f32 %v472_v35, 0.0  ;;  %v696_v35 = vand.u32 4, %v1640_v25 }
  0xb5   : > { %v499_v43 = vmax.f32 %v490_v36, 0.0  ;;  %v700_v36 = vand.u32 8, %v1632_v14  ;;  %vm1714_vm14 = vcmp.ne.s32.totalorder %v683_v32, 0 }
  0xb6   : > { %vm1699_vm11 = vcmp.ne.s32.totalorder %v696_v35, 0 }
  0xb7   : > { %vm1707_vm12 = vcmp.ne.s32.totalorder %v700_v36, 0 }
  0xb9   : > { %v473_v37 = vpop.f32.mrf.mxu0 }
  0xba   : > { %v474_v38 = vadd.f32 %v473_v37, %v441_v33  ;;  %v491_v39 = vpop.f32.mrf.mxu1  ;;  %v684_v37 = vand.u32 1, %v1640_v25 }
  0xbb   : > { %v492_v40 = vadd.f32 %v491_v39, %v442_v34 }
  0xbc   : > { %v500_v42 = vmax.f32 %v474_v38, 0.0 }
  0xbd   : > { %v501_v44 = vmax.f32 %v492_v40, 0.0 }
  0xbe   : > { %v504_v45 = vpack.c.bf16 %v500_v42, %v498_v41 }
  0xbf   : > { %v505_v46 = vpack.c.bf16 %v501_v44, %v499_v43 }
  0xc0   : > { %648 = vmatmul.bf16.vlgmr.msrb.gmra.mxu0 %v504_v45 }
  0xc1   : > { %666 = vmatmul.bf16.vlgmr.msrb.gmra.mxu1 %v505_v46  ;;  %v476_v47 = vpop.f32.mrf.mxu0 }
  0xc2   : > { %v477_v48 = vadd.f32 %v476_v47, %v441_v33  ;;  %v494_v49 = vpop.f32.mrf.mxu1 }
  0xc3   : > { %v495_v50 = vadd.f32 %v494_v49, %v442_v34  ;;  %v688_v49 = vand.u32 2, %v1632_v14 }
  0xc4   : > { %v502_v51 = vmax.f32 %v477_v48, 0.0  ;;  %v701_v48 = vand.u32 8, %v1636_v19 }
  0xc5   : > { %v503_v52 = vmax.f32 %v495_v50, 0.0 }
  0xc6   : > { %v506_v53 = vpack.c.bf16 %v502_v51, %v502_v51  ;;  %vm1693_vm10 = vcmp.ne.s32.totalorder %v701_v48, 0 }
  0xc7   : > { %v507_v54 = vpack.c.bf16 %v503_v52, %v503_v52 }
  0xc8   : > { %653 = vmatmul.bf16.vlgmr.msra.gmra.mxu2 %v506_v53 }
  0xc9   : > { %671 = vmatmul.bf16.vlgmr.msra.gmra.mxu3 %v507_v54  ;;  %v478_v55 = vpop.f32.mrf.mxu0 }
  0xca   : > { %v496_v56 = vpop.f32.mrf.mxu1 }
 0x13d   : > { %v649_v58 = vpop.f32.mrf.mxu0 }
 0x13e   : > { %v650_v59 = vadd.f32 %v1266_v57, %v649_v58  ;;  %v667_v60 = vpop.f32.mrf.mxu1 }
 0x140   : > { %v1621_v61 = vadd.f32 %v667_v60, %v650_v59  ;;  %v689_v59 = vand.u32 2, %v1636_v19 }
 0x142   : > { %v706_v62 = vand.u32 2147483647, %v1621_v61  ;;  %v718_v39 = vmax.f32 %v1621_v61, 0.0  ;;  %v751_v41 = vsel %vm1645_vm1, %v1621_v61, 0.0  ;;  %vm836_vm4 = vcmp.ge.f32.partialorder %v1621_v61, 0.0 }
 0x143   : > { %v771_v53 = vsel %vm1654_vm2, %v1621_v61, 0.0 }
 0x144   : > { %v709_v63 = vsub.f32 0.0, %v706_v62 }
 0x145   : > { %v651_v0 = vpop.f32.mrf.mxu0 }
 0x146   : > { %v712_v1 = vmul.f32 1.442695, %v709_v63  ;;  %v652_v2 = vadd.f32 %v1266_v57, %v651_v0  ;;  %v669_v3 = vpop.f32.mrf.mxu1 }
 0x148   : > { %1267 = vpow2.f32 %v712_v1  ;;  %v1625_v4 = vadd.f32 %v669_v3, %v652_v2 }
 0x14a   : > { %v707_v5 = vand.u32 2147483647, %v1625_v4  ;;  %v719_v55 = vmax.f32 %v1625_v4, 0.0  ;;  %vm837_vm15 = vcmp.ge.f32.partialorder %v1625_v4, 0.0  ;;  %v752_v36 = vsel %vm1667_vm3, %v1625_v4, 0.0 }
 0x14b   : > { %v654_v6 = vpop.f32.mrf.mxu2 }
 0x14c   : > { %v710_v8 = vsub.f32 0.0, %v707_v5  ;;  %v655_v9 = vadd.f32 %v1266_v57, %v654_v6  ;;  %v672_v10 = vpop.f32.mrf.mxu3 }
 0x14e   : > { %v1628_v11 = vpop.eup %1267  ;;  %v714_v12 = vmul.f32 1.442695, %v710_v8  ;;  %v1630_v13 = vadd.f32 %v672_v10, %v655_v9 }
 0x14f   : > { %v721_v15 = vadd.f32 1.0, %v1628_v11  ;;  %v724_v29 = vmul.f32 -0.5, %v1628_v11  ;;  %v727_v45 = vand.u32 2147483647, %v1628_v11 }
 0x150   : > { %1269 = vpow2.f32 %v714_v12  ;;  %v708_v16 = vand.u32 2147483647, %v1630_v13  ;;  %v720_v35 = vmax.f32 %v1630_v13, 0.0 }
 0x151   : > { %1271 = vrcp.f32 %v721_v15  ;;  %v725_v44 = vadd.f32 1.0, %v724_v29  ;;  %v803_v46 = vand.u32 2147483647, %v721_v15  ;;  %v805_v47 = vand.u32 2147483648, %v721_v15 }
 0x152   : > { %v711_v18 = vsub.f32 0.0, %v708_v16  ;;  %1273 = vlog2.f32 %v721_v15  ;;  %vm799_vm6 = vweird.f32 %v721_v15  ;;  %vm1687_vm7 = vcmp.lt.f32.partialorder %v727_v45, 0.0004427343 }
 0x153   : > { %v656_v21 = vpop.f32.mrf.mxu2  ;;  %v726_v58 = vmul.f32 %v1628_v11, %v725_v44  ;;  %vm804_vm9 = vcmp.eq.f32.partialorder %v803_v46, 8.507059e+37  ;;  %v806_v63 = vor.u32 1.1754944e-38, %v805_v47 }
 0x154   : > { %v716_v23 = vmul.f32 1.442695, %v711_v18  ;;  %v674_v24 = vpop.f32.mrf.mxu3 }
 0x156   : > { %v1642_v26 = vpop.eup %1269  ;;  %1275 = vpow2.f32 %v716_v23 }
 0x157   : > { %v1272_v30 = vpop.eup %1271  ;;  %v1651_v31 = vadd.f32 1.0, %v1642_v26  ;;  %v733_v40 = vmul.f32 -0.5, %v1642_v26  ;;  %v736_v60 = vand.u32 2147483647, %v1642_v26 }
 0x158   : > { %v795_v34 = vmul.f32 %v1272_v30, %v721_v15  ;;  %v1274_v38 = vpop.eup %1273  ;;  %vm800_vm5 = vweird.f32 %v1272_v30 }
 0x159   : > { %1277 = vrcp.f32 %v1651_v31  ;;  %v723_v52 = vmul.f32 0.6931472, %v1274_v38  ;;  %v734_v56 = vadd.f32 1.0, %v733_v40  ;;  %vm801_vm8 = vmor %vm799_vm6, %vm800_vm5  ;;  %v817_v9 = vand.u32 2147483647, %v1651_v31 }
 0x15a   : > { %v796_v42 = vsub.f32 1.0, %v795_v34  ;;  %1279 = vlog2.f32 %v1651_v31  ;;  %v819_v18 = vand.u32 2147483648, %v1651_v31  ;;  %vm737_vm13 = vcmp.lt.f32.partialorder %v736_v60, 0.0004427343 }
 0x15b   : > { %v729_v7 = vsel %vm1687_vm7, %v726_v58, %v723_v52  ;;  %v735_v15 = vmul.f32 %v1642_v26, %v734_v56  ;;  %vm1722_vm5 = vcmp.ne.s32.totalorder %v684_v37, 0  ;;  %vm813_vm6 = vweird.f32 %v1651_v31 }
 0x15c   : > { %v1676_v50 = vpop.eup %1275  ;;  %v797_v51 = vmul.f32 %v1272_v30, %v796_v42  ;;  %v748_v24 = vadd.f32 %v729_v7, %v718_v39  ;;  %v702_v34 = vand.u32 8, %v1640_v25  ;;  %v820_v42 = vor.u32 1.1754944e-38, %v819_v18 }
 0x15d   : > { %v1682_v54 = vadd.f32 1.0, %v1676_v50  ;;  %v742_v1 = vmul.f32 -0.5, %v1676_v50  ;;  %v745_v23 = vand.u32 2147483647, %v1676_v50 }
 0x15e   : > { %v798_v57 = vadd.f32 %v1272_v30, %v797_v51  ;;  %v754_v43 = vsub.f32 %v748_v24, %v751_v41  ;;  %v753_v41 = vsel %vm1699_vm11, %v1630_v13, 0.0  ;;  %vm692_vm11 = vcmp.ne.s32.totalorder %v689_v59, 0 }
 0x15f   : > { %v1278_v62 = vpop.eup %1277  ;;  %1281 = vrcp.f32 %v1682_v54  ;;  %v743_v22 = vadd.f32 1.0, %v742_v1  ;;  %v831_v44 = vand.u32 2147483647, %v1682_v54  ;;  %v833_v51 = vand.u32 2147483648, %v1682_v54 }
 0x160   : > { %v1280_v2 = vpop.eup %1279  ;;  %v802_v3 = vsel %vm801_vm8, %v1272_v30, %v798_v57  ;;  %v809_v5 = vmul.f32 %v1278_v62, %v1651_v31  ;;  %1283 = vlog2.f32 %v1682_v54  ;;  %vm814_vm0 = vweird.f32 %v1278_v62 }
 0x161   : > { %v807_v8 = vsel %vm804_vm9, %v806_v63, %v802_v3  ;;  %v732_v12 = vmul.f32 0.6931472, %v1280_v2  ;;  %vm815_vm7 = vmor %vm813_vm6, %vm814_vm0  ;;  %v744_v45 = vmul.f32 %v1676_v50, %v743_v22  ;;  %vm746_vm8 = vcmp.lt.f32.partialorder %v745_v23, 0.0004427343 }
 0x162   : > { %v839_v16 = vmul.f32 %v1628_v11, %v807_v8  ;;  %v810_v17 = vsub.f32 1.0, %v809_v5  ;;  %vm827_vm9 = vweird.f32 %v1682_v54  ;;  %v757_v63 = vsel %vm1707_vm12, %v754_v43, 0.0 }
 0x163   : > { %v738_v21 = vsel %vm737_vm13, %v735_v15, %v732_v12  ;;  %vm1750_vm13 = vcmp.ne.s32.totalorder %v702_v34, 0  ;;  %v690_v1 = vand.u32 2, %v1640_v25  ;;  %v772_v2 = vsel %vm1714_vm14, %v1625_v4, 0.0 }
 0x164   : > { %v842_v27 = vsel %vm836_vm4, %v807_v8, %v839_v16  ;;  %v811_v11 = vmul.f32 %v1278_v62, %v810_v17  ;;  %v749_v29 = vadd.f32 %v738_v21, %v719_v55  ;;  %vm818_vm4 = vcmp.eq.f32.partialorder %v817_v9, 8.507059e+37 }
 0x165   : > { %v1282_v32 = vpop.eup %1281  ;;  %845 = vst [vmem:[%s1728_s8] sm:$0xff] %v842_v27  ;;  %v773_v8 = vsel %vm1722_vm5, %v1630_v13, 0.0  ;;  %v774_v4 = vsub.f32 %v748_v24, %v771_v53  ;;  %vm838_vm12 = vcmp.ge.f32.partialorder %v1630_v13, 0.0  ;;  %vm691_vm14 = vcmp.ne.s32.totalorder %v688_v49, 0 }
 0x166   : > { %v1284_v37 = vpop.eup %1283  ;;  %v812_v38 = vadd.f32 %v1278_v62, %v811_v11  ;;  %v823_v39 = vmul.f32 %v1282_v32, %v1682_v54  ;;  %v755_v40 = vsub.f32 %v749_v29, %v752_v36  ;;  %vm828_vm3 = vweird.f32 %v1282_v32 }
 0x167   : > { %v741_v31 = vmul.f32 0.6931472, %v1284_v37  ;;  %vm829_vm1 = vmor %vm827_vm9, %vm828_vm3  ;;  %v834_v54 = vor.u32 1.1754944e-38, %v833_v51  ;;  %v775_v5 = vsub.f32 %v749_v29, %v772_v2 }
 0x168   : > { %v816_v46 = vsel %vm815_vm7, %v1278_v62, %v812_v38  ;;  %v824_v47 = vsub.f32 1.0, %v823_v39  ;;  %v758_v58 = vsel %vm1693_vm10, %v755_v40, 0.0  ;;  %vm832_vm10 = vcmp.eq.f32.partialorder %v831_v44, 8.507059e+37 }
 0x169   : > { %v821_v48 = vsel %vm818_vm4, %v820_v42, %v816_v46  ;;  %v747_v52 = vsel %vm746_vm8, %v744_v45, %v741_v31  ;;  %v760_v0 = vadd.f32 %v758_v58, %v757_v63  ;;  %v778_v12 = vsel %vm692_vm11, %v775_v5, 0.0 }
 0x16a   : > { %v840_v55 = vmul.f32 %v1642_v26, %v821_v48  ;;  %v825_v56 = vmul.f32 %v1282_v32, %v824_v47  ;;  %v750_v57 = vadd.f32 %v747_v52, %v720_v35 }
 0x16c   : > { %v843_v26 = vsel %vm837_vm15, %v821_v48, %v840_v55  ;;  %v826_v60 = vadd.f32 %v1282_v32, %v825_v56  ;;  %v756_v62 = vsub.f32 %v750_v57, %v753_v41  ;;  %v776_v9 = vsub.f32 %v750_v57, %v773_v8 }
 0x16d   : > { %846 = vst [vmem:[%s1728_s8 + $0x8] sm:$0xff] %v843_v26  ;;  %vm693_vm15 = vcmp.ne.s32.totalorder %v690_v1, 0 }
 0x16e   : > { %v830_v19 = vsel %vm829_vm1, %v1282_v32, %v826_v60  ;;  %v759_v3 = vsel %vm1750_vm13, %v756_v62, 0.0  ;;  %v779_v33 = vsel %vm693_vm15, %v776_v9, 0.0 }
 0x16f   : > { %v835_v6 = vsel %vm832_vm10, %v834_v54, %v830_v19  ;;  %v761_v7 = vadd.f32 %v760_v0, %v759_v3 }
 0x170   : > { %v841_v25 = vmul.f32 %v1676_v50, %v835_v6  ;;  %v777_v50 = vsel %vm691_vm14, %v774_v4, 0.0 }
 0x171   : > { %762 = vadd.xlane.f32.xlu0 %v761_v7  ;;  %v780_v15 = vadd.f32 %v778_v12, %v777_v50 }
 0x172   : > { %v844_v10 = vsel %vm838_vm12, %v835_v6, %v841_v25 }
 0x173   : > { %847 = vst [vmem:[%s1728_s8 + $0x10] sm:$0xff] %v844_v10  ;;  %v781_v61 = vadd.f32 %v780_v15, %v779_v33 }
 0x179   : > { %782 = vadd.xlane.f32.xlu0 %v781_v61 }
 0x17a   : > { %1340 = shalt.err (!%p1337_p10)
}
 0x17b   : > { %s1432_s30 = smov 128   ;;  %s1433_s13 = smov 384   ;;  %v848_v29 = vlaneseq }
 0x17c   : > { %s1434_s8 = smov 8   ;;  %s1071_s12 = sshll.u32 %s1554_s9, 3 }
 0x17d   : > { %1200 = dma.vmem_to_hbm [thread:$0]  (%p1526_p9), %s883_s19, 384, %s885_s24, %s863_s26, %s1432_s30, %s1433_s13, %s1434_s8   ;;  %v849_v30 = vshrl.u32 %v848_v29, 7  ;;  %v851_v32 = vand.u32 127, %v848_v29 }
 0x17e   : > { %s898_s19 = scalar_lea.hbm %s1846_s7, %s1149_s10  ;;  %s419_s24 = scalar_lea.vmem [#allocation7], %s1071_s12 }
 0x17f   : > { %vm852_vm2 = vcmp.eq.s32.totalorder %v849_v30, 0  ;;  %vm855_vm0 = vcmp.eq.s32.totalorder %v851_v32, 1  ;;  %vm853_vm5 = vcmp.eq.s32.totalorder %v851_v32, 0  ;;  %s900_s26 = sshll.u32 %s419_s24, 4  ;;  %s902_s16 = sshll.u32 %s898_s19, 4  ;;  %s901_s26 = int_to_ptr.vmem [resolvable:$true] %s900_s26  ;;  %s903_s16 = int_to_ptr.hbm [resolvable:$true] %s902_s16 }
 0x180   : > { %vm856_vm6 = vmand %vm852_vm2, %vm855_vm0  ;;  %s868_s27 = scalar_lea.sflag [#allocation8], %s1554_s9  ;;  %s1355_s21 = sshra.s32 %s903_s16, 4  ;;  %s1356_s21 = int_to_ptr.hbm [resolvable:$true] %s1355_s21 }
 0x181   : > { %vm854_vm4 = vmand %vm852_vm2, %vm853_vm5  ;;  %s1357_s10 = scalar_lea.hbm %s1356_s21, 8  ;;  %s1361_s23 = scalar_lea.hbm %s1846_s7, 24 }
 0x182   : > { %p1358_p12 = scmp.ne.s32.totalorder %s1356_s21, %s1357_s10  ;;  %p1362_p1 = scmp.lt.s32.totalorder %s1356_s21, %s1846_s7 }
 0x183   : > { %p1363_p2 = scmp.lt.s32.totalorder %s1361_s23, %s1357_s10 }
 0x184   : > { %p1359_p13 = pnand %p1358_p12, %p1526_p9 }
 0x185   : > { %p1364_p3 = por %p1363_p2, %p1362_p1 }
 0x186   : > { %p1360_p0 = pneg %p1359_p13 }
 0x188   : > { %p1365_p4 = pnand %p1364_p3, %p1360_p0 }
 0x1e4   : > { %v763_v13 = vpop.xlane.xlu0 %762 }
 0x1e5   : > { %v764_v14 = vrot.slane %v763_v13, 4 }
 0x1e7   : > { %v765_v49 = vadd.f32 %v764_v14, %v763_v13 }
 0x1e9   : > { %v766_v53 = vrot.slane %v765_v49, 2 }
 0x1eb   : > { %v767_v16 = vadd.f32 %v766_v53, %v765_v49 }
 0x1ec   : > { %v783_v17 = vpop.xlane.xlu0 %782 }
 0x1ed   : > { %v784_v18 = vrot.slane %v783_v17, 4  ;;  %v768_v20 = vrot.slane %v767_v16, 1 }
 0x1ef   : > { %v785_v21 = vadd.f32 %v784_v18, %v783_v17  ;;  %v769_v22 = vadd.f32 %v768_v20, %v767_v16 }
 0x1f1   : > { %v786_v23 = vrot.slane %v785_v21, 2  ;;  %1194 = vpush %v769_v22 }
 0x1f3   : > { %v787_v24 = vadd.f32 %v786_v23, %v785_v21 }
 0x1f5   : > { %v788_v27 = vrot.slane %v787_v24, 1 }
 0x1f7   : > { %v789_v11 = vadd.f32 %v788_v27, %v787_v24 }
 0x1f9   : > { %1196 = vpush %v789_v11 }
 0x222   : > { %s1195_s15 = spop %1194 }
 0x223   : > { %v859_v35 = vstv %s1195_s15 }
 0x22a   : > { %s1197_s17 = spop %1196 }
 0x22b   : > { %v857_v34 = vstv %s1197_s17 }
 0x22c   : > { %v858_v36 = vsel %vm856_vm6, %v857_v34, 0.0 }
 0x22d   : > { %v860_v37 = vsel %vm854_vm4, %v859_v35, %v858_v36 }
 0x22e   : > { %861 = vst [vmem:[%s419_s24] sm:$0xff] %v860_v37 }
 0x22f   : > { %1368 = shalt.err (!%p1365_p4)
}
 0x230   : > { %1201 = dma.vmem_to_hbm [thread:$0]  (%p1526_p9), %s901_s26, 128, %s903_s16, %s868_s27  }
 0x231 PF: > { %s1880_s9 = sld [smem:[#allocation12_spill]]  ;;  %p1211_p5 = scmp.ge.s32.totalorder %s1427_s29, 2 }
 0x233   : > { %p1205_p6 = pnand %p1211_p5, %p1533_p11 }
 0x235   : > { %p1206_p7 = pneg %p1205_p6 }
 0x237   : > { %s914_s12 = sand.u32 1, %s1880_s9  }
 0x238   : > { %s915_s20 = scalar_lea.sflag [#allocation4], %s914_s12 }
 0x239   : > { %1398 = dma.done.wait (%p1206_p7), %s915_s20, 384  }
 0x23a   : > { %1400 = vsyncadd (%p1206_p7), %s915_s20, 4294966912  ;;  %s925_s18 = scalar_lea.sflag [#allocation8], %s914_s12 }
 0x23b   : > { %1402 = dma.done.wait (%p1206_p7), %s925_s18, 128  }
 0x23c   : > { %1404 = vsyncadd (%p1206_p7), %s925_s18, 4294967168  ;;  %s27_s29 = sadd.s32 1, %s1427_s29   ;;  %s1882_s14 = sld [smem:[#allocation13_spill]] }
 0x23d   : > { %p24_p8 = scmp.ge.s32.totalorder %s27_s29, 5   ;;  %s1883_s26 = sld [smem:[#allocation15_spill]] }
 0x23e   : > { %s1884_s19 = sld [smem:[#allocation14_spill]]  ;;  %s1885_s24 = smov %s1411_s25 }
 0x23f   : > { %s1887_s27 = smov %s1423_s28 }
 0x240   :  { %26 = sbr.rel (!%p24_p8) target bundleno = 8 (0x8), region = 154 }
 0x242   : > { %s1886_s25 = smov %s1882_s14 }
 0x244   : > { %s1888_s28 = smov %s1884_s19 }
 0x245   :  { %931 = vsyncpa [#allocation3], 1 }
 0x246   :  { %933 = vsyncpa [#allocation3 + $0x1], 1 }
 0x247   :  { %934 = vsyncpa [#allocation4], 1 }
 0x248   :  { %936 = vsyncpa [#allocation4 + $0x1], 1 }
 0x249   :  { %937 = vsyncpa [#allocation8], 1 }
 0x24a   :  { %939 = vsyncpa [#allocation8 + $0x1], 1 }

</bundles_post_ra>
